<compile_context>
chip_gen: v7x
topology: tpu7x:2x2x1
jax: 0.10.0
libtpu: 0.0.40
codegen_flags: <defaults>
</compile_context>

<pallas_src>
import jax
import jax.numpy as jnp
from jax.experimental import pallas as pl
from jax.experimental.pallas import tpu as pltpu


def rnn_elman(x, h, Wih, Whh, bih, Why, bhy,
              act1=jnp.tanh, act2=jax.nn.sigmoid):
    """One Elman RNN step. Returns (y, h_new)."""
    B, I = x.shape
    H = Whh.shape[0]
    O = Why.shape[1]                      # output width from Why (may differ from H)

    y_dtype = jnp.result_type(h.dtype, Why.dtype, bhy.dtype)
    h_dtype = h.dtype

    # Biases as (1, N) rows: free metadata reshape, broadcasts on the VPU.
    bih2 = bih.reshape(1, H)
    bhy2 = bhy.reshape(1, O)

    def kernel(x_ref, h_ref, wih_ref, whh_ref, bih_ref, why_ref, bhy_ref,
               y_ref, hout_ref):
        # pre_h = x @ Wih + h @ Whh + bih   (two MXU dots, f32 accumulation,
        # bias add on the VPU — no bias-as-weight-row packing needed).
        pre_h = jnp.dot(x_ref[...], wih_ref[...],
                        preferred_element_type=jnp.float32)
        pre_h = pre_h + jnp.dot(h_ref[...], whh_ref[...],
                                preferred_element_type=jnp.float32)
        pre_h = pre_h + bih_ref[...].astype(jnp.float32)
        h_new = act1(pre_h)               # f32 elementwise (v5e has no bf16 VPU/EUP)

        h_in = h_new if h_new.dtype == why_ref.dtype else h_new.astype(why_ref.dtype)
        pre_y = jnp.dot(h_in, why_ref[...],
                        preferred_element_type=jnp.float32)
        pre_y = pre_y + bhy_ref[...].astype(jnp.float32)
        y = act2(pre_y)

        # Two direct stores → two writeback DMAs, no in-kernel concat temp.
        y_ref[...] = y.astype(y_ref.dtype)
        hout_ref[...] = h_new.astype(hout_ref.dtype)

    # Batch-row tiling: weights stay VMEM-resident (constant index_map); the
    # batch axis is "parallel" so v7x can shard it across its 2 TensorCores.
    tb = B
    for cand in (256, 128):
        if B >= 2 * cand and B % cand == 0:
            tb = cand
            break
    grid = (B // tb,)

    row_spec = lambda w: pl.BlockSpec((tb, w), lambda i: (i, 0))      # per-batch tile
    res_spec = lambda shape: pl.BlockSpec(shape, lambda i: (0, 0))    # resident block

    # Rough resident VMEM footprint (×2 for double buffering of batch tiles);
    # raise the scoped limit only if the small defaults would not cover it.
    def _bytes(shape, dt):
        n = 1
        for s in shape:
            n *= s
        return n * jnp.dtype(dt).itemsize
    footprint = (2 * (_bytes((tb, I), x.dtype) + _bytes((tb, H), h.dtype)
                      + _bytes((tb, O), y_dtype) + _bytes((tb, H), h_dtype))
                 + _bytes(Wih.shape, Wih.dtype) + _bytes(Whh.shape, Whh.dtype)
                 + _bytes(Why.shape, Why.dtype)
                 + _bytes(bih2.shape, bih.dtype) + _bytes(bhy2.shape, bhy.dtype))
    vmem_limit = None
    if footprint > (12 << 20):
        vmem_limit = min(int(footprint * 2) + (4 << 20), 64 << 20)

    y, h_new = pl.pallas_call(
        kernel,
        out_shape=(jax.ShapeDtypeStruct((B, O), y_dtype),
                   jax.ShapeDtypeStruct((B, H), h_dtype)),
        grid=grid,
        in_specs=[
            row_spec(I),                 # x
            row_spec(H),                 # h
            res_spec(Wih.shape),         # Wih (VMEM-resident)
            res_spec(Whh.shape),         # Whh (VMEM-resident)
            res_spec(bih2.shape),        # bih
            res_spec(Why.shape),         # Why (VMEM-resident)
            res_spec(bhy2.shape),        # bhy
        ],
        out_specs=(row_spec(O), row_spec(H)),
        compiler_params=pltpu.CompilerParams(
            dimension_semantics=("parallel",),
            vmem_limit_bytes=vmem_limit),
    )(x, h, Wih, Whh, bih2, Why, bhy2)

    return y, h_new


def rnn_elman_ref(x, h, Wih, Whh, bih, Why, bhy,
                  act1=jnp.tanh, act2=jax.nn.sigmoid):
    h_new = act1(x @ Wih + h @ Whh + bih)
    y = act2(h_new @ Why + bhy)
    return y, h_new


if __name__ == "__main__":
    batch = 8
    input_size = 16
    hidden_size = 32
    dtype = jnp.float32

    key = jax.random.PRNGKey(0)
    kx, kh, k1, k2, k3, k4, k5 = jax.random.split(key, 7)

    scale = 1.0 / jnp.sqrt(hidden_size)
    Wih = jax.random.uniform(k1, (input_size, hidden_size), dtype, -scale, scale)
    Whh = jax.random.uniform(k2, (hidden_size, hidden_size), dtype, -scale, scale)
    bih = jax.random.uniform(k3, (hidden_size,), dtype, -scale, scale)
    Why = jax.random.uniform(k4, (hidden_size, hidden_size), dtype, -scale, scale)
    bhy = jax.random.uniform(k5, (hidden_size,), dtype, -scale, scale)

    x = jax.random.normal(kx, (batch, input_size), dtype)
    h = jax.random.normal(kh, (batch, hidden_size), dtype)

    y, h_new = rnn_elman(x, h, Wih, Whh, bih, Why, bhy)
    jax.block_until_ready((y, h_new))

    y_ref, h_ref_ = rnn_elman_ref(x, h, Wih, Whh, bih, Why, bhy)
    assert y.dtype == y_ref.dtype and h_new.dtype == h.dtype
    assert jnp.allclose(y, y_ref, atol=1e-5, rtol=1e-5), "y mismatch"
    assert jnp.allclose(h_new, h_ref_, atol=1e-5, rtol=1e-5), "h mismatch"

    print("KERNEL_OK")
</pallas_src>

<mosaic_0001>
module attributes {stable_mosaic.version = 11 : i64} {
  func.func @kernel(%arg0: i32, %arg1: memref<8x16xf32, #tpu.memory_space<vmem>>, %arg2: memref<8x32xf32, #tpu.memory_space<vmem>>, %arg3: memref<16x32xf32, #tpu.memory_space<vmem>>, %arg4: memref<32x32xf32, #tpu.memory_space<vmem>>, %arg5: memref<1x32xf32, #tpu.memory_space<vmem>>, %arg6: memref<32x32xf32, #tpu.memory_space<vmem>>, %arg7: memref<1x32xf32, #tpu.memory_space<vmem>>, %arg8: memref<8x32xf32, #tpu.memory_space<vmem>>, %arg9: memref<8x32xf32, #tpu.memory_space<vmem>>) attributes {dimension_semantics = [#tpu.dimension_semantics<parallel>], iteration_bounds = array<i64: 1>, scalar_prefetch = 0 : i64, scratch_operands = 0 : i64, tpu.core_type = #tpu.core_type<tc>, window_params = [{transform_indices = @transform_0, window_bounds = array<i64: 8, 16>}, {transform_indices = @transform_1, window_bounds = array<i64: 8, 32>}, {pipeline_mode = #tpu.pipeline_mode<synchronous>, transform_indices = @transform_2, window_bounds = array<i64: 16, 32>}, {pipeline_mode = #tpu.pipeline_mode<synchronous>, transform_indices = @transform_3, window_bounds = array<i64: 32, 32>}, {pipeline_mode = #tpu.pipeline_mode<synchronous>, transform_indices = @transform_4, window_bounds = array<i64: 1, 32>}, {pipeline_mode = #tpu.pipeline_mode<synchronous>, transform_indices = @transform_5, window_bounds = array<i64: 32, 32>}, {pipeline_mode = #tpu.pipeline_mode<synchronous>, transform_indices = @transform_6, window_bounds = array<i64: 1, 32>}, {transform_indices = @transform_7, window_bounds = array<i64: 8, 32>}, {transform_indices = @transform_8, window_bounds = array<i64: 8, 32>}]} {
    %c0 = arith.constant 0 : index
    %c0_0 = arith.constant 0 : index
    %0 = vector.load %arg1[%c0, %c0_0] : memref<8x16xf32, #tpu.memory_space<vmem>>, vector<8x16xf32>
    %c0_1 = arith.constant 0 : index
    %c0_2 = arith.constant 0 : index
    %1 = vector.load %arg3[%c0_1, %c0_2] : memref<16x32xf32, #tpu.memory_space<vmem>>, vector<16x32xf32>
    %cst = arith.constant dense<0.000000e+00> : vector<8x32xf32>
    %2 = tpu.matmul %0, %1, %cst {dimension_numbers = #tpu.dot_dimension_numbers<[1], [0], [0], [1], [0, 0, 1, 1], [], []>} : vector<8x16xf32>, vector<16x32xf32>, vector<8x32xf32> -> vector<8x32xf32>
    %c0_3 = arith.constant 0 : index
    %c0_4 = arith.constant 0 : index
    %3 = vector.load %arg2[%c0_3, %c0_4] : memref<8x32xf32, #tpu.memory_space<vmem>>, vector<8x32xf32>
    %c0_5 = arith.constant 0 : index
    %c0_6 = arith.constant 0 : index
    %4 = vector.load %arg4[%c0_5, %c0_6] : memref<32x32xf32, #tpu.memory_space<vmem>>, vector<32x32xf32>
    %cst_7 = arith.constant dense<0.000000e+00> : vector<8x32xf32>
    %5 = tpu.matmul %3, %4, %cst_7 {dimension_numbers = #tpu.dot_dimension_numbers<[1], [0], [0], [1], [0, 0, 1, 1], [], []>} : vector<8x32xf32>, vector<32x32xf32>, vector<8x32xf32> -> vector<8x32xf32>
    %6 = arith.addf %2, %5 : vector<8x32xf32>
    %c0_8 = arith.constant 0 : index
    %c0_9 = arith.constant 0 : index
    %7 = vector.load %arg5[%c0_8, %c0_9] : memref<1x32xf32, #tpu.memory_space<vmem>>, vector<1x32xf32>
    %8 = vector.broadcast %7 : vector<1x32xf32> to vector<8x32xf32>
    %9 = arith.addf %6, %8 : vector<8x32xf32>
    %10 = math.tanh %9 : vector<8x32xf32>
    %c0_10 = arith.constant 0 : index
    %c0_11 = arith.constant 0 : index
    %11 = vector.load %arg6[%c0_10, %c0_11] : memref<32x32xf32, #tpu.memory_space<vmem>>, vector<32x32xf32>
    %cst_12 = arith.constant dense<0.000000e+00> : vector<8x32xf32>
    %12 = tpu.matmul %10, %11, %cst_12 {dimension_numbers = #tpu.dot_dimension_numbers<[1], [0], [0], [1], [0, 0, 1, 1], [], []>} : vector<8x32xf32>, vector<32x32xf32>, vector<8x32xf32> -> vector<8x32xf32>
    %c0_13 = arith.constant 0 : index
    %c0_14 = arith.constant 0 : index
    %13 = vector.load %arg7[%c0_13, %c0_14] : memref<1x32xf32, #tpu.memory_space<vmem>>, vector<1x32xf32>
    %14 = vector.broadcast %13 : vector<1x32xf32> to vector<8x32xf32>
    %15 = arith.addf %12, %14 : vector<8x32xf32>
    %16 = arith.negf %15 : vector<8x32xf32>
    %17 = math.exp %16 : vector<8x32xf32>
    %cst_15 = arith.constant 1.000000e+00 : f32
    %18 = vector.broadcast %cst_15 : f32 to vector<8x32xf32>
    %19 = arith.addf %18, %17 : vector<8x32xf32>
    %20 = arith.divf %18, %19 : vector<8x32xf32>
    %c0_16 = arith.constant 0 : index
    %c0_17 = arith.constant 0 : index
    %21 = vector.load %arg8[%c0_16, %c0_17] : memref<8x32xf32, #tpu.memory_space<vmem>>, vector<8x32xf32>
    tpu.vector_store %arg8[%c0_16, %c0_17], %20 {strides = array<i32>} : memref<8x32xf32, #tpu.memory_space<vmem>>, vector<8x32xf32>,
    %c0_18 = arith.constant 0 : index
    %c0_19 = arith.constant 0 : index
    %22 = vector.load %arg9[%c0_18, %c0_19] : memref<8x32xf32, #tpu.memory_space<vmem>>, vector<8x32xf32>
    tpu.vector_store %arg9[%c0_18, %c0_19], %10 {strides = array<i32>} : memref<8x32xf32, #tpu.memory_space<vmem>>, vector<8x32xf32>,
    return
  }
  func.func @transform_0(%arg0: i32) -> (i32, i32) {
    %c0_i32 = arith.constant 0 : i32
    %c0_i32_0 = arith.constant 0 : i32
    return %arg0, %c0_i32 : i32, i32
  }
  func.func @transform_1(%arg0: i32) -> (i32, i32) {
    %c0_i32 = arith.constant 0 : i32
    %c0_i32_0 = arith.constant 0 : i32
    return %arg0, %c0_i32 : i32, i32
  }
  func.func @transform_2(%arg0: i32) -> (i32, i32) {
    %c0_i32 = arith.constant 0 : i32
    %c0_i32_0 = arith.constant 0 : i32
    %c0_i32_1 = arith.constant 0 : i32
    return %c0_i32, %c0_i32_0 : i32, i32
  }
  func.func @transform_3(%arg0: i32) -> (i32, i32) {
    %c0_i32 = arith.constant 0 : i32
    %c0_i32_0 = arith.constant 0 : i32
    %c0_i32_1 = arith.constant 0 : i32
    return %c0_i32, %c0_i32_0 : i32, i32
  }
  func.func @transform_4(%arg0: i32) -> (i32, i32) {
    %c0_i32 = arith.constant 0 : i32
    %c0_i32_0 = arith.constant 0 : i32
    %c0_i32_1 = arith.constant 0 : i32
    return %c0_i32, %c0_i32_0 : i32, i32
  }
  func.func @transform_5(%arg0: i32) -> (i32, i32) {
    %c0_i32 = arith.constant 0 : i32
    %c0_i32_0 = arith.constant 0 : i32
    %c0_i32_1 = arith.constant 0 : i32
    return %c0_i32, %c0_i32_0 : i32, i32
  }
  func.func @transform_6(%arg0: i32) -> (i32, i32) {
    %c0_i32 = arith.constant 0 : i32
    %c0_i32_0 = arith.constant 0 : i32
    %c0_i32_1 = arith.constant 0 : i32
    return %c0_i32, %c0_i32_0 : i32, i32
  }
  func.func @transform_7(%arg0: i32) -> (i32, i32) {
    %c0_i32 = arith.constant 0 : i32
    %c0_i32_0 = arith.constant 0 : i32
    return %arg0, %c0_i32 : i32, i32
  }
  func.func @transform_8(%arg0: i32) -> (i32, i32) {
    %c0_i32 = arith.constant 0 : i32
    %c0_i32_0 = arith.constant 0 : i32
    return %arg0, %c0_i32 : i32, i32
  }
}

</mosaic_0001>

<bundles_post_ra>
// kernel: tpu_custom_call.1
= control target key start
LH: loop header
LB: loop body
LE: loop exit
PB: predicated region body
PF: predicated region fallthrough
CT: control target
= control target key end

     0   :  { %14 = vsyncpa [#allocation3], 0  ;;  %s790_s0 = inlined_call_operand.hbm [shape: f32[8,16], index: 0, kind: input, shape index: {}]   ;;  %s791_s1 = inlined_call_operand.hbm [shape: f32[8,32], index: 1, kind: input, shape index: {}]   ;;  %s792_s2 = inlined_call_operand.hbm [shape: f32[16,32], index: 2, kind: input, shape index: {}]   ;;  %s793_s3 = inlined_call_operand.hbm [shape: f32[32,32], index: 3, kind: input, shape index: {}]   ;;  %s794_s4 = inlined_call_operand.vmem [shape: f32[1,32], index: 4, kind: input, shape index: {}]   ;;  %s795_s5 = inlined_call_operand.hbm [shape: f32[32,32], index: 5, kind: input, shape index: {}]   ;;  %s796_s6 = inlined_call_operand.vmem [shape: f32[1,32], index: 6, kind: input, shape index: {}]   ;;  %s797_s7 = inlined_call_operand.hbm [shape: f32[8,32], index: 7, kind: output, shape index: {0}]   ;;  %s798_s8 = inlined_call_operand.hbm [shape: f32[8,32], index: 8, kind: output, shape index: {1}]  }
   0x1   :  { %15 = vsyncpa [#allocation6], 0 }
   0x2   :  { %16 = vsyncpa [#allocation9], 0 }
   0x3   :  { %17 = vsyncpa [#allocation4], 0 }
   0x4   :  { %18 = vsyncpa [#allocation13], 0  ;;  %s627_s27 = smov [#allocation5]   ;;  %s463_s9 = scalar_lea.hbm %s791_s1, 128 }
   0x5   :  { %s35_s28 = sshll.u32 %s627_s27, 4  ;;  %p464_p0 = scmp.ne.s32.totalorder %s791_s1, %s463_s9  ;;  %s36_s28 = int_to_ptr.vmem [resolvable:$true] %s35_s28 }
   0x6   :  { %p467_p1 = scmp.lt.u32.totalorder %s463_s9, %s791_s1 }
   0x8   :  { %p469_p2 = pnand %p467_p1, %p464_p0 }
   0xa   :  { %472 = shalt.err (!%p469_p2)
}
   0xb   :  { %s473_s14 = scalar_lea.vmem %s36_s28, 128  ;;  %p478_p4 = scmp.lt.s32.totalorder %s36_s28, %s36_s28 }
   0xc   :  { %p474_p3 = scmp.ne.s32.totalorder %s36_s28, %s473_s14  ;;  %p479_p5 = scmp.lt.s32.totalorder %s473_s14, %s473_s14 }
   0xe   :  { %p480_p6 = por %p479_p5, %p478_p4 }
  0x10   :  { %p481_p7 = pnand %p480_p6, %p474_p3 }
  0x12   :  { %484 = shalt.err (!%p481_p7)
}
  0x13   :  { %38 = dma.hbm_to_vmem [thread:$0]  %s791_s1, 128, %s36_s28, [#allocation6]  }
  0x14   :  { %s628_s17 = smov [#allocation8]   ;;  %s629_s19 = smov [#allocation2]  }
  0x15   :  { %s56_s18 = sshll.u32 %s628_s17, 4  ;;  %s25_s20 = sshll.u32 %s629_s19, 4  ;;  %s57_s18 = int_to_ptr.vmem [resolvable:$true] %s56_s18  ;;  %s26_s20 = int_to_ptr.vmem [resolvable:$true] %s25_s20 }
  0x16   :  { %s485_s23 = scalar_lea.hbm %s793_s3, 512 }
  0x17   :  { %p486_p8 = scmp.ne.s32.totalorder %s793_s3, %s485_s23  ;;  %p489_p9 = scmp.lt.u32.totalorder %s485_s23, %s793_s3 }
  0x19   :  { %p491_p10 = pnand %p489_p9, %p486_p8 }
  0x1b   :  { %494 = shalt.err (!%p491_p10)
}
  0x1c   :  { %s495_s1 = scalar_lea.vmem %s57_s18, 512  ;;  %p500_p12 = scmp.lt.s32.totalorder %s57_s18, %s57_s18 }
  0x1d   :  { %p496_p11 = scmp.ne.s32.totalorder %s57_s18, %s495_s1  ;;  %p501_p13 = scmp.lt.s32.totalorder %s495_s1, %s495_s1 }
  0x1f   :  { %p502_p0 = por %p501_p13, %p500_p12 }
  0x21   :  { %p503_p1 = pnand %p502_p0, %p496_p11 }
  0x23   :  { %506 = shalt.err (!%p503_p1)
}
  0x24   :  { %s630_s28 = smov 128   ;;  %s631_s29 = smov 8  }
  0x25   :  { %62 = dma.hbm_to_vmem [thread:$0]  %s793_s3, 512, %s57_s18, [#allocation9], %s630_s28, %s630_s28, %s631_s29  }
  0x26   :  { %s507_s12 = scalar_lea.hbm %s790_s0, 128 }
  0x27   :  { %p508_p2 = scmp.ne.s32.totalorder %s790_s0, %s507_s12  ;;  %p511_p3 = scmp.lt.u32.totalorder %s507_s12, %s790_s0 }
  0x29   :  { %p513_p4 = pnand %p511_p3, %p508_p2 }
  0x2b   :  { %516 = shalt.err (!%p513_p4)
}
  0x2c   :  { %s517_s17 = scalar_lea.vmem %s26_s20, 128  ;;  %p522_p6 = scmp.lt.s32.totalorder %s26_s20, %s26_s20 }
  0x2d   :  { %p518_p5 = scmp.ne.s32.totalorder %s26_s20, %s517_s17  ;;  %p523_p7 = scmp.lt.s32.totalorder %s517_s17, %s517_s17 }
  0x2f   :  { %p524_p8 = por %p523_p7, %p522_p6 }
  0x31   :  { %p525_p9 = pnand %p524_p8, %p518_p5 }
  0x33   :  { %528 = shalt.err (!%p525_p9)
}
  0x34   :  { %28 = dma.hbm_to_vmem [thread:$0]  %s790_s0, 128, %s26_s20, [#allocation3]  }
  0x35   :  { %s632_s19 = smov [#allocation7]   ;;  %s633_s22 = smov [#allocation10]  }
  0x36   :  { %s44_s21 = sshll.u32 %s632_s19, 4  ;;  %s70_s23 = sshll.u32 %s633_s22, 4  ;;  %s45_s21 = int_to_ptr.vmem [resolvable:$true] %s44_s21  ;;  %s71_s23 = int_to_ptr.vmem [resolvable:$true] %s70_s23 }
  0x37   :  { %s529_s26 = scalar_lea.hbm %s792_s2, 256 }
  0x38   :  { %p530_p10 = scmp.ne.s32.totalorder %s792_s2, %s529_s26  ;;  %p533_p11 = scmp.lt.u32.totalorder %s529_s26, %s792_s2 }
  0x3a   :  { %p535_p12 = pnand %p533_p11, %p530_p10 }
  0x3c   :  { %538 = shalt.err (!%p535_p12)
}
  0x3d   :  { %s539_s0 = scalar_lea.vmem %s45_s21, 256  ;;  %p544_p0 = scmp.lt.s32.totalorder %s45_s21, %s45_s21 }
  0x3e   :  { %p540_p13 = scmp.ne.s32.totalorder %s45_s21, %s539_s0  ;;  %p545_p1 = scmp.lt.s32.totalorder %s539_s0, %s539_s0 }
  0x40   :  { %p546_p2 = por %p545_p1, %p544_p0 }
  0x42   :  { %p547_p3 = pnand %p546_p2, %p540_p13 }
  0x44   :  { %550 = shalt.err (!%p547_p3)
}
  0x45   :  { %50 = dma.hbm_to_vmem [thread:$0]  %s792_s2, 256, %s45_s21, [#allocation6], %s630_s28, %s630_s28, %s631_s29  }
  0x46   :  { %s551_s13 = scalar_lea.hbm %s795_s5, 512 }
  0x47   :  { %p552_p4 = scmp.ne.s32.totalorder %s795_s5, %s551_s13  ;;  %p555_p5 = scmp.lt.u32.totalorder %s551_s13, %s795_s5 }
  0x49   :  { %p557_p6 = pnand %p555_p5, %p552_p4 }
  0x4b   :  { %560 = shalt.err (!%p557_p6)
}
  0x4c   :  { %s561_s3 = scalar_lea.vmem %s71_s23, 512  ;;  %p566_p8 = scmp.lt.s32.totalorder %s71_s23, %s71_s23 }
  0x4d   :  { %p562_p7 = scmp.ne.s32.totalorder %s71_s23, %s561_s3  ;;  %p567_p9 = scmp.lt.s32.totalorder %s561_s3, %s561_s3 }
  0x4f   :  { %p568_p10 = por %p567_p9, %p566_p8 }
  0x51   :  { %p569_p11 = pnand %p568_p10, %p562_p7 }
  0x53   :  { %572 = shalt.err (!%p569_p11)
}
  0x54   :  { %76 = dma.hbm_to_vmem [thread:$0]  %s795_s5, 512, %s71_s23, [#allocation9], %s630_s28, %s630_s28, %s631_s29  }
  0x55   :  { %617 = dma.done.wait [#allocation3], 128  }
  0x56   :  { %618 = vsyncadd [#allocation3], 4294967168 }
  0x57   :  { %619 = dma.done.wait [#allocation6], 384  }
  0x58   :  { %620 = vsyncadd [#allocation6], 4294966912 }
  0x59   :  { %621 = dma.done.wait [#allocation9], 1024  }
  0x5a   :  { %622 = vsyncadd [#allocation9], 4294966272  ;;  %v634_v0 = vmov 0.0|0.0   ;;  %vm635_vm0 = vmmov 0   ;;  %v636_v1 = vmov 0.0   ;;  %v98_v2 = vld [vmem:[#allocation8] sm:$0xff] }
  0x5b   :  { %430 = vmatprep.subr.bf16.mxu0 %v634_v0  ;;  %436 = vmatprep.subr.bf16.mxu1 %v634_v0  ;;  %v99_v3 = vld [vmem:[#allocation8 + $0x8] sm:$0xff]  ;;  %v95_v4 = vld [vmem:[#allocation7] sm:$0xff]  ;;  %v96_v6 = vld [vmem:[#allocation7 + $0x8] sm:$0xff]  ;;  %vm176_vm1 = vcmask 130048   ;;  %vm102_vm2 = vcmask 261120   ;;  %s637_s29 = smov [#allocation12]  }
  0x5c   :  { %416 = vmatprep.mubr.msk.f32.mxu1 %vm635_vm0, %v636_v1  ;;  %409 = vmatprep.mubr.msk.f32.mxu0 %vm635_vm0, %v636_v1  ;;  %v431_v5 = vpack.c.bf16 %v99_v3, %v98_v2  ;;  %v100_v7 = vld [vmem:[#allocation8 + $0x10] sm:$0xff]  ;;  %v101_v8 = vld [vmem:[#allocation8 + $0x18] sm:$0xff]  ;;  %v437_v9 = vpack.c.bf16 %v96_v6, %v95_v4  ;;  %v94_v11 = vld [vmem:[#allocation2] sm:$0xff]  ;;  %s367_s19 = sshll.u32 %s637_s29, 4  ;;  %s368_s19 = int_to_ptr.vmem [resolvable:$true] %s367_s19 }
  0x5d   :  { %v434_v10 = vpack.c.bf16 %v101_v8, %v100_v7  ;;  %v97_v12 = vld [vmem:[#allocation5] sm:$0xff]  ;;  %v259_v13 = vld [vmem:[#allocation10] sm:$0xff]  ;;  %v261_v16 = vld [vmem:[#allocation10 + $0x10] sm:$0xff]  ;;  %s573_s21 = scalar_lea.vmem %s368_s19, 128  ;;  %p578_p13 = scmp.lt.s32.totalorder %s368_s19, %s368_s19 }
  0x5e   :  { %432 = vmatpush3.bf16.msra.mxu0 %v431_v5  ;;  %438 = vmatpush3.bf16.msra.mxu1 %v437_v9  ;;  %v260_v14 = vld [vmem:[#allocation10 + $0x8] sm:$0xff]  ;;  %v262_v17 = vld [vmem:[#allocation10 + $0x18] sm:$0xff]  ;;  %v384_v22 = vld [vmem:[%s794_s4] ss:$0 sm:$0xff]  ;;  %p574_p12 = scmp.ne.s32.totalorder %s368_s19, %s573_s21  ;;  %p579_p0 = scmp.lt.s32.totalorder %s573_s21, %s573_s21 }
  0x5f   :  { %433 = vmatprep.subr.bf16.mxu0 %v634_v0  ;;  %439 = vmatprep.subr.bf16.mxu1 %v634_v0  ;;  %v440_v15 = vpack.c.bf16 %v260_v14, %v259_v13  ;;  %v443_v18 = vpack.c.bf16 %v262_v17, %v261_v16 }
  0x60   :  { %p580_p1 = por %p579_p0, %p578_p13 }
  0x61   :  { %417 = vmatmul.mubr.msk.f32.vlgmr.msra.gmra.mrb[0].mxu1 %vm176_vm1, %v94_v11 }
  0x62   :  { %435 = vmatpush3.bf16.msra.mxu0 %v434_v10  ;;  %427 = vmatprep.mubr.msk.f32.mxu1 %vm635_vm0, %v636_v1  ;;  %p581_p2 = pnand %p580_p1, %p574_p12 }
  0x63   :  { %441 = vmatpush3.bf16.msra.mxu1 %v440_v15 }
  0x64   :  { %442 = vmatprep.subr.bf16.mxu1 %v634_v0 }
  0x65   :  { %410 = vmatmul.mubr.msk.f32.vlgmr.msra.gmra.mrb[0].mxu0 %vm102_vm2, %v97_v12 }
  0x67   :  { %444 = vmatpush3.bf16.msra.mxu1 %v443_v18 }
 0x134   :  { %v246_v19 = vpop.f32.mrb[0].mxu1 }
 0x135   :  { %v418_v20 = vpop.f32.mrb[1].mxu1 }
 0x138   :  { %v172_v21 = vpop.f32.mrb[0].mxu0 }
 0x139   :  { %v247_v23 = vadd.f32 %v246_v19, %v172_v21  ;;  %v411_v24 = vpop.f32.mrb[1].mxu0 }
 0x13b   :  { %v257_v25 = vadd.f32 %v384_v22, %v247_v23 }
 0x13d   :  { %457 = vtanh.f32 %v257_v25 }
 0x147   :  { %v458_v26 = vpop.eup %457 }
 0x148   :  { %350 = vst.msk [vmem:[#allocation12] sm:$0xff] %vm102_vm2, %v458_v26  ;;  %428 = vmatmul.mubr.msk.f32.vlgmr.msra.gmra.mrb[2].mxu1 %vm102_vm2, %v458_v26 }
 0x149   :  { %584 = shalt.err (!%p581_p2)
}
 0x14a   :  { %s585_s23 = scalar_lea.hbm %s798_s8, 128 }
 0x14b   :  { %p586_p3 = scmp.ne.s32.totalorder %s798_s8, %s585_s23  ;;  %p589_p4 = scmp.lt.u32.totalorder %s585_s23, %s798_s8 }
 0x14d   :  { %p591_p5 = pnand %p589_p4, %p586_p3 }
 0x14f   :  { %594 = shalt.err (!%p591_p5)
}
 0x150   :  { %370 = dma.vmem_to_hbm [thread:$0]  %s368_s19, 128, %s798_s8, [#allocation13]   ;;  %v385_v27 = vld [vmem:[%s796_s6] ss:$0 sm:$0xff] }
 0x151   :  { %s638_s20 = smov [#allocation11]  }
 0x152   :  { %s357_s10 = sshll.u32 %s638_s20, 4  ;;  %s358_s10 = int_to_ptr.vmem [resolvable:$true] %s357_s10 }
 0x153   :  { %s595_s11 = scalar_lea.vmem %s358_s10, 128  ;;  %p600_p7 = scmp.lt.s32.totalorder %s358_s10, %s358_s10 }
 0x154   :  { %p596_p6 = scmp.ne.s32.totalorder %s358_s10, %s595_s11  ;;  %p601_p8 = scmp.lt.s32.totalorder %s595_s11, %s595_s11 }
 0x156   :  { %p602_p9 = por %p601_p8, %p600_p7 }
 0x158   :  { %p603_p10 = pnand %p602_p9, %p596_p6 }
 0x21b   :  { %v339_v28 = vpop.f32.mrb[2].mxu1 }
 0x21c   :  { %v340_v29 = vadd.f32 %v385_v27, %v339_v28  ;;  %v429_v30 = vpop.f32.mrb[3].mxu1 }
 0x21e   :  { %v387_v31 = vmul.f32 -1.442695, %v340_v29 }
 0x220   :  { %459 = vpow2.f32 %v387_v31 }
 0x22a   :  { %v460_v32 = vpop.eup %459 }
 0x22b   :  { %v346_v33 = vadd.f32 1.0, %v460_v32 }
 0x22d   :  { %461 = vrcp.f32 %v346_v33 }
 0x237   :  { %v462_v34 = vpop.eup %461 }
 0x238   :  { %349 = vst.msk [vmem:[#allocation11] sm:$0xff] %vm102_vm2, %v462_v34 }
 0x239   :  { %606 = shalt.err (!%p603_p10)
}
 0x23a   :  { %s607_s12 = scalar_lea.hbm %s797_s7, 128 }
 0x23b   :  { %p608_p11 = scmp.ne.s32.totalorder %s797_s7, %s607_s12  ;;  %p611_p12 = scmp.lt.u32.totalorder %s607_s12, %s797_s7 }
 0x23d   :  { %p613_p13 = pnand %p611_p12, %p608_p11 }
 0x23f   :  { %616 = shalt.err (!%p613_p13)
}
 0x240   :  { %360 = dma.vmem_to_hbm [thread:$0]  %s358_s10, 128, %s797_s7, [#allocation4]  }
 0x241   :  { %623 = dma.done.wait [#allocation4], 128  }
 0x242   :  { %624 = vsyncadd [#allocation4], 4294967168 }
 0x243   :  { %625 = dma.done.wait [#allocation13], 128  }
 0x244   :  { %626 = vsyncadd [#allocation13], 4294967168 }
 0x245   :  { %377 = vsyncpa [#allocation3], 1 }
 0x246   :  { %378 = vsyncpa [#allocation6], 1 }
 0x247   :  { %379 = vsyncpa [#allocation9], 1 }
 0x248   :  { %380 = vsyncpa [#allocation4], 1 }
 0x249   :  { %381 = vsyncpa [#allocation13], 1 }

</bundles_post_ra>
